<compile_context>
chip_gen: v7x
topology: tpu7x:2x2x1
jax: 0.10.0
libtpu: 0.0.40
codegen_flags: <defaults>
</compile_context>

<pallas_src>
import functools
import math

import jax
import jax.numpy as jnp
from jax import lax
from jax.experimental import pallas as pl
from jax.experimental.pallas import tpu as pltpu


def _round_up(x, m):
    return (x + m - 1) // m * m


def _pick_tile(dim, cap, align):
    """Tile size: multiple of `align`, <= cap, minimizing padded waste.

    Small dims round up to `align`; larger dims prefer big (>=128) tiles and
    among those pick the one with the least padding (tie-break: larger tile).
    """
    dim_a = _round_up(max(int(dim), 1), align)
    cap = max(align, (int(cap) // align) * align)
    if dim_a <= min(cap, 128):
        return dim_a
    lo = min(128, cap)
    best_t, best_pad = lo, None
    for t in range(lo, cap + 1, align):
        pad = _round_up(dim_a, t) - dim_a
        if best_pad is None or pad < best_pad or (pad == best_pad and t > best_t):
            best_t, best_pad = t, pad
    return best_t


def _default_tile_caps():
    """(max_tm, max_tn, max_tk) caps scaled to the chip's VMEM."""
    try:
        vmem = pltpu.get_tpu_info().vmem_capacity_bytes
    except Exception:
        vmem = 64 << 20
    if vmem >= (100 << 20):      # v5e / v6e: 128 MiB VMEM
        return 512, 512, 1024
    return 256, 512, 512         # v7x-class: 64 MiB VMEM, 2 TCs


def _pad2(a, rows, cols, dtype):
    """Cast + zero-pad a 2-D array; no-op padding when already aligned."""
    a = a.astype(dtype)
    r, c = a.shape
    if r == rows and c == cols:
        return a
    return jnp.pad(a, ((0, rows - r), (0, cols - c)))


def _lora_linear_kernel(x_ref, w_ref, bias_ref, low_ref, a_ref, o_ref, acc_ref):
    # x_ref   : (tm, tk)      input rows tile                  (compute dtype)
    # w_ref   : (tn, tk)      base weight tile, layout (out, in)
    # bias_ref: (1, tn)       base bias tile (f32)
    # low_ref : (tm, r_pad)   precomputed x @ lora_B.T tile    (compute dtype)
    # a_ref   : (tn, r_pad)   (scale * lora_A) tile, layout (out, rank)
    # o_ref   : (tm, tn)      output tile
    # acc_ref : (tm, tn) f32  accumulator (scratch), initialized with the bias
    k = pl.program_id(2)

    @pl.when(k == 0)
    def _():
        acc_ref[...] = jnp.broadcast_to(bias_ref[...], acc_ref.shape)

    # Contract on the shared K axis; W stays in its PyTorch (out, in) layout —
    # the "transpose" is expressed via dot_general dimension_numbers.
    acc_ref[...] += lax.dot_general(
        x_ref[...], w_ref[...], (((1,), (1,)), ((), ())),
        preferred_element_type=jnp.float32)

    @pl.when(k == pl.num_programs(2) - 1)
    def _():
        # Fused LoRA up-projection: (tm, r_pad) @ (tn, r_pad)^T -> (tm, tn).
        lora = lax.dot_general(
            low_ref[...], a_ref[...], (((1,), (1,)), ((), ())),
            preferred_element_type=jnp.float32)
        o_ref[...] = (acc_ref[...] + lora).astype(o_ref.dtype)


def make_lora_linear(W, bias, lora_A, lora_B, *, scale=1.0,
                     compute_dtype=jnp.bfloat16,
                     max_tm=None, max_tn=None, max_tk=None):
    """One-time weight prepare; returns apply(x, enabled=True).

    W      : (out, hidden)  base nn.Linear weight (PyTorch layout)
    bias   : (out,) or None
    lora_A : (out, rank)
    lora_B : (rank, hidden)
    """
    W = jnp.asarray(W)
    lora_A = jnp.asarray(lora_A)
    lora_B = jnp.asarray(lora_B)
    N, K = W.shape
    r = lora_A.shape[1]
    assert lora_A.shape == (N, r), (lora_A.shape, (N, r))
    assert lora_B.shape == (r, K), (lora_B.shape, (r, K))
    if bias is None:
        bias = jnp.zeros((N,), jnp.float32)
    bias = jnp.asarray(bias)

    d_tm, d_tn, d_tk = _default_tile_caps()
    max_tm = d_tm if max_tm is None else max_tm
    max_tn = d_tn if max_tn is None else max_tn
    max_tk = d_tk if max_tk is None else max_tk

    tn = _pick_tile(N, max_tn, 128)
    tk = _pick_tile(K, max_tk, 128)
    Np, Kp = _round_up(N, tn), _round_up(K, tk)
    # Rank padded to a lane width only for the (cheap, once-per-(i,j)) epilogue
    # up-projection; it no longer appears in the per-k-step inner loop.
    r_pad = _round_up(max(r, 1), 128)

    # ---- one-time weight prep (cast + pad; skipped when already aligned) ----
    Wp = _pad2(W, Np, Kp, compute_dtype)                               # (Np, Kp)
    Ap = _pad2(jnp.float32(scale) * lora_A.astype(jnp.float32),        # scale folded once
               Np, r_pad, compute_dtype)                               # (Np, r_pad)
    bias_p = _pad2(bias.reshape(1, N), 1, Np, jnp.float32)             # (1, Np)
    B_T = lora_B.astype(jnp.float32).T                                 # (K, r) for the down-proj

    @functools.partial(jax.jit, static_argnames=("enabled",))
    def _apply(Wp, Ap, bias_p, B_T, x, enabled=True):
        orig_shape = x.shape
        out_dtype = x.dtype
        x2d = x.reshape(-1, orig_shape[-1])
        M = x2d.shape[0]
        assert x2d.shape[1] == K, (x2d.shape, K)

        tm = _pick_tile(M, max_tm, 16)
        Mp = _round_up(M, tm)
        xp = _pad2(x2d, Mp, Kp, compute_dtype)

        if enabled:
            # Tiny down-projection done once here (f32); the kernel only fuses
            # the up-projection.  Recomputing it per N-tile inside the k-loop
            # was ~50% redundant MXU work / DMA (see perf review).
            low = jnp.dot(x2d.astype(jnp.float32), B_T,
                          preferred_element_type=jnp.float32)          # (M, r)
            low_p = _pad2(low, Mp, r_pad, compute_dtype)
        else:
            low_p = jnp.zeros((Mp, r_pad), compute_dtype)

        # Keep >=2 parallel (i,j) tiles where possible (v7x megacore / 2 TCs).
        tn_l = tn
        while (Mp // tm) * (Np // tn_l) < 2 and tn_l >= 256 and Np % (tn_l // 2) == 0:
            tn_l //= 2

        grid = (Mp // tm, Np // tn_l, Kp // tk)

        # Small-M (GEMV-like) shapes are HBM-bound on W: buffer it 3-deep.
        w_bufs = 2
        if tm <= 64 and (Kp // tk) >= 3:
            w_bufs = 3
            w_spec = pl.BlockSpec((tn_l, tk), lambda i, j, k: (j, k),
                                  pipeline_mode=pl.Buffered(w_bufs))
        else:
            w_spec = pl.BlockSpec((tn_l, tk), lambda i, j, k: (j, k))

        itm = jnp.dtype(compute_dtype).itemsize
        out_it = jnp.dtype(out_dtype).itemsize
        vmem_bytes = (2 * tm * tk * itm            # x double buffer
                      + w_bufs * tn_l * tk * itm   # W buffers
                      + 2 * tn_l * 4               # bias
                      + 2 * tm * r_pad * itm       # low
                      + 2 * tn_l * r_pad * itm     # scale*lora_A
                      + 2 * tm * tn_l * out_it     # out double buffer
                      + tm * tn_l * 4)             # f32 accumulator scratch
        vmem_limit = int(min(110 << 20, max(2 * vmem_bytes, 24 << 20)))

        cost = pl.CostEstimate(
            flops=2 * M * N * K + 2 * M * r_pad * N,
            transcendentals=0,
            bytes_accessed=int(xp.size * itm + Wp.size * itm + bias_p.size * 4
                               + low_p.size * itm + Ap.size * itm
                               + Mp * Np * out_it))

        out2d = pl.pallas_call(
            _lora_linear_kernel,
            out_shape=jax.ShapeDtypeStruct((Mp, Np), out_dtype),
            grid_spec=pltpu.PrefetchScalarGridSpec(
                num_scalar_prefetch=0,
                grid=grid,
                in_specs=[
                    pl.BlockSpec((tm, tk), lambda i, j, k: (i, k)),      # x rows
                    w_spec,                                              # W (out, in)
                    pl.BlockSpec((1, tn_l), lambda i, j, k: (0, j)),     # bias
                    pl.BlockSpec((tm, r_pad), lambda i, j, k: (i, 0)),   # x @ lora_B.T
                    pl.BlockSpec((tn_l, r_pad), lambda i, j, k: (j, 0)), # scale*lora_A
                ],
                out_specs=pl.BlockSpec((tm, tn_l), lambda i, j, k: (i, j)),
                scratch_shapes=[pltpu.VMEM((tm, tn_l), jnp.float32)],
            ),
            compiler_params=pltpu.CompilerParams(
                dimension_semantics=("parallel", "parallel", "arbitrary"),
                vmem_limit_bytes=vmem_limit,
            ),
            cost_estimate=cost,
        )(xp, Wp, bias_p, low_p, Ap)

        out2d = out2d[:M, :N]
        return out2d.reshape(*orig_shape[:-1], N)

    def apply(x, enabled=True):
        return _apply(Wp, Ap, bias_p, B_T, x, enabled=enabled)

    return apply


def lora_linear(x, W, bias, lora_A, lora_B, *, scale=1.0, enabled=True,
                compute_dtype=jnp.bfloat16, **tile_kwargs):
    """One-off convenience wrapper.  For repeated calls with the same weights,
    use make_lora_linear(...) so the weight cast/pad happens only once."""
    fn = make_lora_linear(W, bias, lora_A, lora_B, scale=scale,
                          compute_dtype=compute_dtype, **tile_kwargs)
    return fn(x, enabled=enabled)


if __name__ == "__main__":
    key = jax.random.PRNGKey(0)
    k_x, k_w, k_b, k_a, k_lb = jax.random.split(key, 5)

    batch, seq, hidden, out_dim, rank = 2, 8, 32, 32, 4
    scale = 0.5

    x = jax.random.normal(k_x, (batch, seq, hidden), dtype=jnp.float32)

    # Base nn.Linear parameters (deterministic synthetic init).
    W = jax.random.normal(k_w, (out_dim, hidden), dtype=jnp.float32) * 0.1
    bias = jax.random.normal(k_b, (out_dim,), dtype=jnp.float32) * 0.1

    # lora_A: kaiming_uniform_(a=sqrt(5)) over shape (out_dim, rank).
    bound = math.sqrt(6.0 / ((1.0 + 5.0) * rank))
    lora_A = jax.random.uniform(k_a, (out_dim, rank), dtype=jnp.float32,
                                minval=-bound, maxval=bound)
    # NOTE: the PyTorch module zero-inits lora_B; small random values here so
    # the LoRA path of the kernel is actually exercised/verified.
    lora_B = jax.random.normal(k_lb, (rank, hidden), dtype=jnp.float32) * 0.05

    # Pure-JAX reference (mirrors the PyTorch forward exactly, f32).
    x2d = x.reshape(-1, hidden)
    ref = (x2d @ W.T + bias) + scale * (x2d @ lora_B.T @ lora_A.T)
    ref = ref.reshape(batch, seq, out_dim)

    # 1) f32 compute path through the prepared (hoisted weight-prep) callable.
    apply_f32 = make_lora_linear(W, bias, lora_A, lora_B, scale=scale,
                                 compute_dtype=jnp.float32)
    y32 = jax.block_until_ready(apply_f32(x))
    assert y32.shape == (batch, seq, out_dim), y32.shape
    assert jnp.allclose(y32, ref, atol=1e-4, rtol=1e-4), \
        float(jnp.max(jnp.abs(y32 - ref)))

    # 2) default bf16 compute (f32 accumulation) via the one-off wrapper.
    y16 = jax.block_until_ready(
        lora_linear(x, W, bias, lora_A, lora_B, scale=scale, enabled=True))
    assert y16.shape == (batch, seq, out_dim), y16.shape
    assert jnp.allclose(y16, ref, atol=5e-2, rtol=5e-2), \
        float(jnp.max(jnp.abs(y16 - ref)))

    # 3) disabled branch (plain Linear through the same kernel, LoRA term zeroed).
    ref_off = (x2d @ W.T + bias).reshape(batch, seq, out_dim)
    y_off = jax.block_until_ready(apply_f32(x, enabled=False))
    assert jnp.allclose(y_off, ref_off, atol=1e-4, rtol=1e-4)

    # 4) 2-D input path (len(shape) == 2 branch of the PyTorch forward).
    y2d = jax.block_until_ready(apply_f32(x2d))
    assert y2d.shape == (batch * seq, out_dim), y2d.shape
    assert jnp.allclose(y2d, ref.reshape(-1, out_dim), atol=1e-4, rtol=1e-4)

    print("KERNEL_OK")
</pallas_src>

<mosaic_0001>
module attributes {stable_mosaic.version = 11 : i64} {
  func.func @_lora_linear_kernel(%arg0: i32, %arg1: i32, %arg2: i32, %arg3: memref<16x128xf32, #tpu.memory_space<vmem>>, %arg4: memref<128x128xf32, #tpu.memory_space<vmem>>, %arg5: memref<1x128xf32, #tpu.memory_space<vmem>>, %arg6: memref<16x128xf32, #tpu.memory_space<vmem>>, %arg7: memref<128x128xf32, #tpu.memory_space<vmem>>, %arg8: memref<16x128xf32, #tpu.memory_space<vmem>>, %arg9: memref<16x128xf32, #tpu.memory_space<vmem>>) attributes {dimension_semantics = [#tpu.dimension_semantics<parallel>, #tpu.dimension_semantics<parallel>, #tpu.dimension_semantics<arbitrary>], iteration_bounds = array<i64: 1, 1, 1>, scalar_prefetch = 0 : i64, scratch_operands = 1 : i64, tpu.core_type = #tpu.core_type<tc>, window_params = [{transform_indices = @transform_0, window_bounds = array<i64: 16, 128>}, {transform_indices = @transform_1, window_bounds = array<i64: 128, 128>}, {transform_indices = @transform_2, window_bounds = array<i64: 1, 128>}, {transform_indices = @transform_3, window_bounds = array<i64: 16, 128>}, {transform_indices = @transform_4, window_bounds = array<i64: 128, 128>}, {transform_indices = @transform_5, window_bounds = array<i64: 16, 128>}]} {
    %c0_i32 = arith.constant 0 : i32
    %0 = arith.cmpi eq, %arg2, %c0_i32 : i32
    %1 = arith.extui %0 : i1 to i32
    %c0_i32_0 = arith.constant 0 : i32
    %2 = arith.cmpi ne, %1, %c0_i32_0 : i32
    scf.if %2 {
      %c0_10 = arith.constant 0 : index
      %c0_11 = arith.constant 0 : index
      %12 = vector.load %arg5[%c0_10, %c0_11] : memref<1x128xf32, #tpu.memory_space<vmem>>, vector<1x128xf32>
      %13 = vector.shape_cast %12 : vector<1x128xf32> to vector<1x128xf32>
      %14 = vector.broadcast %13 : vector<1x128xf32> to vector<16x128xf32>
      %c0_12 = arith.constant 0 : index
      %c0_13 = arith.constant 0 : index
      %15 = vector.load %arg9[%c0_12, %c0_13] : memref<16x128xf32, #tpu.memory_space<vmem>>, vector<16x128xf32>
      tpu.vector_store %arg9[%c0_12, %c0_13], %14 {strides = array<i32>} : memref<16x128xf32, #tpu.memory_space<vmem>>, vector<16x128xf32>,
    } else {
    }
    %c0 = arith.constant 0 : index
    %c0_1 = arith.constant 0 : index
    %3 = vector.load %arg9[%c0, %c0_1] : memref<16x128xf32, #tpu.memory_space<vmem>>, vector<16x128xf32>
    %c0_2 = arith.constant 0 : index
    %c0_3 = arith.constant 0 : index
    %4 = vector.load %arg3[%c0_2, %c0_3] : memref<16x128xf32, #tpu.memory_space<vmem>>, vector<16x128xf32>
    %c0_4 = arith.constant 0 : index
    %c0_5 = arith.constant 0 : index
    %5 = vector.load %arg4[%c0_4, %c0_5] : memref<128x128xf32, #tpu.memory_space<vmem>>, vector<128x128xf32>
    %cst = arith.constant dense<0.000000e+00> : vector<16x128xf32>
    %6 = tpu.matmul %4, %5, %cst {dimension_numbers = #tpu.dot_dimension_numbers<[1], [1], [0], [0], [0, 0, 1, 0], [], []>} : vector<16x128xf32>, vector<128x128xf32>, vector<16x128xf32> -> vector<16x128xf32>
    %7 = arith.addf %3, %6 : vector<16x128xf32>
    %c0_6 = arith.constant 0 : index
    %c0_7 = arith.constant 0 : index
    %8 = vector.load %arg9[%c0_6, %c0_7] : memref<16x128xf32, #tpu.memory_space<vmem>>, vector<16x128xf32>
    tpu.vector_store %arg9[%c0_6, %c0_7], %7 {strides = array<i32>} : memref<16x128xf32, #tpu.memory_space<vmem>>, vector<16x128xf32>,
    %c0_i32_8 = arith.constant 0 : i32
    %9 = arith.cmpi eq, %arg2, %c0_i32_8 : i32
    %10 = arith.extui %9 : i1 to i32
    %c0_i32_9 = arith.constant 0 : i32
    %11 = arith.cmpi ne, %10, %c0_i32_9 : i32
    scf.if %11 {
      %c0_10 = arith.constant 0 : index
      %c0_11 = arith.constant 0 : index
      %12 = vector.load %arg6[%c0_10, %c0_11] : memref<16x128xf32, #tpu.memory_space<vmem>>, vector<16x128xf32>
      %c0_12 = arith.constant 0 : index
      %c0_13 = arith.constant 0 : index
      %13 = vector.load %arg7[%c0_12, %c0_13] : memref<128x128xf32, #tpu.memory_space<vmem>>, vector<128x128xf32>
      %cst_14 = arith.constant dense<0.000000e+00> : vector<16x128xf32>
      %14 = tpu.matmul %12, %13, %cst_14 {dimension_numbers = #tpu.dot_dimension_numbers<[1], [1], [0], [0], [0, 0, 1, 0], [], []>} : vector<16x128xf32>, vector<128x128xf32>, vector<16x128xf32> -> vector<16x128xf32>
      %c0_15 = arith.constant 0 : index
      %c0_16 = arith.constant 0 : index
      %15 = vector.load %arg9[%c0_15, %c0_16] : memref<16x128xf32, #tpu.memory_space<vmem>>, vector<16x128xf32>
      %16 = arith.addf %15, %14 : vector<16x128xf32>
      %c0_17 = arith.constant 0 : index
      %c0_18 = arith.constant 0 : index
      %17 = vector.load %arg8[%c0_17, %c0_18] : memref<16x128xf32, #tpu.memory_space<vmem>>, vector<16x128xf32>
      tpu.vector_store %arg8[%c0_17, %c0_18], %16 {strides = array<i32>} : memref<16x128xf32, #tpu.memory_space<vmem>>, vector<16x128xf32>,
    } else {
    }
    return
  }
  func.func @transform_0(%arg0: i32, %arg1: i32, %arg2: i32) -> (i32, i32) {
    %c0_i32 = arith.constant 0 : i32
    return %arg0, %arg2 : i32, i32
  }
  func.func @transform_1(%arg0: i32, %arg1: i32, %arg2: i32) -> (i32, i32) {
    %c0_i32 = arith.constant 0 : i32
    return %arg1, %arg2 : i32, i32
  }
  func.func @transform_2(%arg0: i32, %arg1: i32, %arg2: i32) -> (i32, i32) {
    %c0_i32 = arith.constant 0 : i32
    %c0_i32_0 = arith.constant 0 : i32
    return %c0_i32, %arg1 : i32, i32
  }
  func.func @transform_3(%arg0: i32, %arg1: i32, %arg2: i32) -> (i32, i32) {
    %c0_i32 = arith.constant 0 : i32
    %c0_i32_0 = arith.constant 0 : i32
    return %arg0, %c0_i32 : i32, i32
  }
  func.func @transform_4(%arg0: i32, %arg1: i32, %arg2: i32) -> (i32, i32) {
    %c0_i32 = arith.constant 0 : i32
    %c0_i32_0 = arith.constant 0 : i32
    return %arg1, %c0_i32 : i32, i32
  }
  func.func @transform_5(%arg0: i32, %arg1: i32, %arg2: i32) -> (i32, i32) {
    %c0_i32 = arith.constant 0 : i32
    return %arg0, %arg1 : i32, i32
  }
}

</mosaic_0001>

<bundles_post_ra>
// kernel: _apply.1
= control target key start
LH: loop header
LB: loop body
LE: loop exit
PB: predicated region body
PF: predicated region fallthrough
CT: control target
= control target key end

     0   :  { %10 = vsyncpa [#allocation4], 0  ;;  %s574_s0 = inlined_call_operand.vmem [shape: f32[16,128], index: 0, kind: input, shape index: {}]   ;;  %s575_s1 = inlined_call_operand.hbm [shape: f32[128,128], index: 1, kind: input, shape index: {}]   ;;  %s576_s2 = inlined_call_operand.vmem [shape: f32[1,128], index: 2, kind: input, shape index: {}]   ;;  %s577_s3 = inlined_call_operand.vmem [shape: f32[16,128], index: 3, kind: input, shape index: {}]   ;;  %s578_s4 = inlined_call_operand.hbm [shape: f32[128,128], index: 4, kind: input, shape index: {}]   ;;  %s579_s5 = inlined_call_operand.vmem [shape: f32[16,128], index: 5, kind: output, shape index: {}]  }
   0x1   :  { %11 = vsyncpa [#allocation6], 0  ;;  %s495_s18 = smov [#allocation3]   ;;  %s447_s22 = scalar_lea.hbm %s575_s1, 2048 }
   0x2   :  { %s19_s19 = sshll.u32 %s495_s18, 4  ;;  %p448_p0 = scmp.ne.s32.totalorder %s575_s1, %s447_s22  ;;  %s20_s19 = int_to_ptr.vmem [resolvable:$true] %s19_s19 }
   0x3   :  { %p451_p1 = scmp.lt.u32.totalorder %s447_s22, %s575_s1 }
   0x5   :  { %p453_p2 = pnand %p451_p1, %p448_p0 }
   0x7   :  { %456 = shalt.err (!%p453_p2)
}
   0x8   :  { %s457_s27 = scalar_lea.vmem %s20_s19, 2048  ;;  %p462_p4 = scmp.lt.s32.totalorder %s20_s19, %s20_s19 }
   0x9   :  { %p458_p3 = scmp.ne.s32.totalorder %s20_s19, %s457_s27  ;;  %p463_p5 = scmp.lt.s32.totalorder %s457_s27, %s457_s27 }
   0xb   :  { %p464_p6 = por %p463_p5, %p462_p4 }
   0xd   :  { %p465_p7 = pnand %p464_p6, %p458_p3 }
   0xf   :  { %468 = shalt.err (!%p465_p7)
}
  0x10   :  { %s496_s28 = smov 128   ;;  %s497_s29 = smov 8  }
  0x11   :  { %25 = dma.hbm_to_vmem [thread:$0]  %s575_s1, 2048, %s20_s19, [#allocation4], %s496_s28, %s496_s28, %s497_s29  }
  0x12   :  { %s498_s7 = smov [#allocation5]   ;;  %s469_s11 = scalar_lea.hbm %s578_s4, 2048 }
  0x13   :  { %s35_s8 = sshll.u32 %s498_s7, 4  ;;  %p470_p8 = scmp.ne.s32.totalorder %s578_s4, %s469_s11  ;;  %s36_s8 = int_to_ptr.vmem [resolvable:$true] %s35_s8 }
  0x14   :  { %p473_p9 = scmp.lt.u32.totalorder %s469_s11, %s578_s4 }
  0x16   :  { %p475_p10 = pnand %p473_p9, %p470_p8 }
  0x18   :  { %478 = shalt.err (!%p475_p10)
}
  0x19   :  { %s479_s16 = scalar_lea.vmem %s36_s8, 2048  ;;  %p484_p12 = scmp.lt.s32.totalorder %s36_s8, %s36_s8 }
  0x1a   :  { %p480_p11 = scmp.ne.s32.totalorder %s36_s8, %s479_s16  ;;  %p485_p13 = scmp.lt.s32.totalorder %s479_s16, %s479_s16 }
  0x1c   :  { %p486_p0 = por %p485_p13, %p484_p12 }
  0x1e   :  { %p487_p1 = pnand %p486_p0, %p480_p11 }
  0x20   :  { %490 = shalt.err (!%p487_p1)
}
  0x21   :  { %41 = dma.hbm_to_vmem [thread:$0]  %s578_s4, 2048, %s36_s8, [#allocation6], %s496_s28, %s496_s28, %s497_s29  }
  0x22   :  { %491 = dma.done.wait [#allocation4], 2048  }
  0x23   :  { %492 = vsyncadd [#allocation4], 4294965248 }
  0x24   :  { %493 = dma.done.wait [#allocation6], 2048  }
  0x25   :  { %494 = vsyncadd [#allocation6], 4294965248  ;;  %v65_v0 = vld [vmem:[#allocation3] sm:$0xff]  ;;  %v66_v1 = vld [vmem:[#allocation3 + $0x8] sm:$0xff] }
  0x26   :  { %v165_v2 = vld [vmem:[#allocation5] sm:$0xff]  ;;  %v375_v3 = vpack.c.bf16 %v66_v1, %v65_v0  ;;  %v166_v4 = vld [vmem:[#allocation5 + $0x8] sm:$0xff]  ;;  %v67_v5 = vld [vmem:[#allocation3 + $0x10] sm:$0xff] }
  0x27   :  { %v68_v6 = vld [vmem:[#allocation3 + $0x18] sm:$0xff]  ;;  %v407_v7 = vpack.c.bf16 %v166_v4, %v165_v2  ;;  %v167_v9 = vld [vmem:[#allocation5 + $0x10] sm:$0xff]  ;;  %v69_v12 = vld [vmem:[#allocation3 + $0x20] sm:$0xff] }
  0x28   :  { %v379_v8 = vpack.c.bf16 %v68_v6, %v67_v5  ;;  %v168_v10 = vld [vmem:[#allocation5 + $0x18] sm:$0xff]  ;;  %376 = vmatprep.subr.bf16.mxu1 %v375_v3  ;;  %v70_v13 = vld [vmem:[#allocation3 + $0x28] sm:$0xff]  ;;  %v169_v14 = vld [vmem:[#allocation5 + $0x20] sm:$0xff] }
  0x29   :  { %v411_v11 = vpack.c.bf16 %v168_v10, %v167_v9  ;;  %378 = vmatpush3.bf16.xpose.msra.mxu1 %v375_v3  ;;  %408 = vmatprep.subr.bf16.mxu0 %v407_v7  ;;  %v170_v15 = vld [vmem:[#allocation5 + $0x28] sm:$0xff]  ;;  %v383_v16 = vpack.c.bf16 %v70_v13, %v69_v12  ;;  %v63_v18 = vld [vmem:[%s574_s0] sm:$0xff]  ;;  %v71_v20 = vld [vmem:[#allocation3 + $0x30] sm:$0xff] }
  0x2a   :  { %410 = vmatpush3.bf16.xpose.msra.mxu0 %v407_v7  ;;  %380 = vmatprep.subr.bf16.mxu1 %v379_v8  ;;  %v415_v17 = vpack.c.bf16 %v170_v15, %v169_v14  ;;  %v163_v19 = vld [vmem:[%s577_s3] sm:$0xff]  ;;  %v72_v21 = vld [vmem:[#allocation3 + $0x38] sm:$0xff]  ;;  %v171_v22 = vld [vmem:[#allocation5 + $0x30] sm:$0xff] }
  0x2b   :  { %412 = vmatprep.subr.bf16.mxu0 %v411_v11  ;;  %337 = vmatprep.mubr.f32.mxu1 %v63_v18  ;;  %v172_v23 = vld [vmem:[#allocation5 + $0x38] sm:$0xff]  ;;  %v387_v24 = vpack.c.bf16 %v72_v21, %v71_v20  ;;  %v73_v26 = vld [vmem:[#allocation3 + $0x40] sm:$0xff]  ;;  %v74_v27 = vld [vmem:[#allocation3 + $0x48] sm:$0xff] }
  0x2c   :  { %372 = vmatprep.mubr.f32.mxu0 %v163_v19  ;;  %v419_v25 = vpack.c.bf16 %v172_v23, %v171_v22  ;;  %v173_v28 = vld [vmem:[#allocation5 + $0x40] sm:$0xff]  ;;  %v174_v29 = vld [vmem:[#allocation5 + $0x48] sm:$0xff]  ;;  %v391_v30 = vpack.c.bf16 %v74_v27, %v73_v26  ;;  %v75_v32 = vld [vmem:[#allocation3 + $0x50] sm:$0xff] }
  0x2d   :  { %v423_v31 = vpack.c.bf16 %v174_v29, %v173_v28  ;;  %v76_v33 = vld [vmem:[#allocation3 + $0x58] sm:$0xff]  ;;  %v175_v34 = vld [vmem:[#allocation5 + $0x50] sm:$0xff]  ;;  %v77_v38 = vld [vmem:[#allocation3 + $0x60] sm:$0xff] }
  0x2e   :  { %v176_v35 = vld [vmem:[#allocation5 + $0x58] sm:$0xff]  ;;  %v395_v36 = vpack.c.bf16 %v76_v33, %v75_v32  ;;  %v78_v39 = vld [vmem:[#allocation3 + $0x68] sm:$0xff]  ;;  %v177_v40 = vld [vmem:[#allocation5 + $0x60] sm:$0xff] }
  0x2f   :  { %v427_v37 = vpack.c.bf16 %v176_v35, %v175_v34  ;;  %v178_v41 = vld [vmem:[#allocation5 + $0x68] sm:$0xff]  ;;  %v399_v42 = vpack.c.bf16 %v78_v39, %v77_v38  ;;  %v79_v44 = vld [vmem:[#allocation3 + $0x70] sm:$0xff]  ;;  %v80_v45 = vld [vmem:[#allocation3 + $0x78] sm:$0xff] }
  0x30   :  { %v431_v43 = vpack.c.bf16 %v178_v41, %v177_v40  ;;  %v179_v46 = vld [vmem:[#allocation5 + $0x70] sm:$0xff]  ;;  %v180_v47 = vld [vmem:[#allocation5 + $0x78] sm:$0xff]  ;;  %v403_v48 = vpack.c.bf16 %v80_v45, %v79_v44  ;;  %v64_v50 = vld [vmem:[%s574_s0 + $0x8] sm:$0xff] }
  0x31   :  { %382 = vmatpush3.bf16.xpose.msra.mxu1 %v379_v8  ;;  %v435_v49 = vpack.c.bf16 %v180_v47, %v179_v46  ;;  %v164_v51 = vld [vmem:[%s577_s3 + $0x8] sm:$0xff]  ;;  %v268_v52 = vld [vmem:[%s576_s2] ss:$0 sm:$0xff] }
  0x32   :  { %414 = vmatpush3.bf16.xpose.msra.mxu0 %v411_v11  ;;  %384 = vmatprep.subr.bf16.mxu1 %v383_v16 }
  0x33   :  { %416 = vmatprep.subr.bf16.mxu0 %v415_v17 }
  0x39   :  { %386 = vmatpush3.bf16.xpose.msra.mxu1 %v383_v16 }
  0x3a   :  { %418 = vmatpush3.bf16.xpose.msra.mxu0 %v415_v17  ;;  %388 = vmatprep.subr.bf16.mxu1 %v387_v24 }
  0x3b   :  { %420 = vmatprep.subr.bf16.mxu0 %v419_v25 }
  0x41   :  { %390 = vmatpush3.bf16.xpose.msra.mxu1 %v387_v24 }
  0x42   :  { %422 = vmatpush3.bf16.xpose.msra.mxu0 %v419_v25  ;;  %392 = vmatprep.subr.bf16.mxu1 %v391_v30 }
  0x43   :  { %424 = vmatprep.subr.bf16.mxu0 %v423_v31 }
  0x49   :  { %394 = vmatpush3.bf16.xpose.msra.mxu1 %v391_v30 }
  0x4a   :  { %426 = vmatpush3.bf16.xpose.msra.mxu0 %v423_v31  ;;  %396 = vmatprep.subr.bf16.mxu1 %v395_v36 }
  0x4b   :  { %428 = vmatprep.subr.bf16.mxu0 %v427_v37 }
  0x51   :  { %398 = vmatpush3.bf16.xpose.msra.mxu1 %v395_v36 }
  0x52   :  { %430 = vmatpush3.bf16.xpose.msra.mxu0 %v427_v37  ;;  %400 = vmatprep.subr.bf16.mxu1 %v399_v42 }
  0x53   :  { %432 = vmatprep.subr.bf16.mxu0 %v431_v43 }
  0x59   :  { %402 = vmatpush3.bf16.xpose.msra.mxu1 %v399_v42 }
  0x5a   :  { %434 = vmatpush3.bf16.xpose.msra.mxu0 %v431_v43  ;;  %404 = vmatprep.subr.bf16.mxu1 %v403_v48 }
  0x5b   :  { %436 = vmatprep.subr.bf16.mxu0 %v435_v49 }
  0x61   :  { %406 = vmatpush3.bf16.xpose.msra.mxu1 %v403_v48 }
  0x62   :  { %438 = vmatpush3.bf16.xpose.msra.mxu0 %v435_v49 }
  0x68   :  { %338 = vmatmul.mubr.f32.vlgmr.msra.gmra.mrb[0].mxu1 %v64_v50 }
  0x69   :  { %373 = vmatmul.mubr.f32.vlgmr.msra.gmra.mrb[0].mxu0 %v164_v51 }
 0x13b   :  { %v339_v53 = vpop.f32.mrb[0].mxu1 }
 0x13c   :  { %v157_v54 = vadd.f32 %v339_v53, %v268_v52  ;;  %v147_v55 = vpop.f32.mrb[1].mxu1  ;;  %v374_v56 = vpop.f32.mrb[0].mxu0 }
 0x13d   :  { %v156_v57 = vadd.f32 %v268_v52, %v147_v55  ;;  %v247_v58 = vpop.f32.mrb[1].mxu0 }
 0x13e   :  { %v259_v59 = vadd.f32 %v374_v56, %v157_v54 }
 0x13f   :  { %v258_v60 = vadd.f32 %v247_v58, %v156_v57 }
 0x140   :  { %261 = vst [vmem:[%s579_s5 + $0x8] sm:$0xff] %v259_v59 }
 0x141   :  { %260 = vst [vmem:[%s579_s5] sm:$0xff] %v258_v60 }
 0x142   :  { %266 = vsyncpa [#allocation4], 1 }
 0x143   :  { %267 = vsyncpa [#allocation6], 1 }

</bundles_post_ra>
